<compile_context>
chip_gen: v7x
topology: tpu7x:2x2x1
jax: 0.10.0
libtpu: 0.0.40
codegen_flags: <defaults>
</compile_context>

<pallas_src>
import functools
import math

import jax
import jax.numpy as jnp
from jax.experimental import pallas as pl
from jax.experimental.pallas import tpu as pltpu

EXPANSION = 4
BN_EPS = 1e-5
VMEM_LIMIT = 32 * 1024 * 1024  # safe on v5e/v6e/v7x; tiles use well under this


def _round_up(x, m):
    return (x + m - 1) // m * m


# --------------------------------------------------------------------------
# Pallas kernels
# --------------------------------------------------------------------------

def _matmul_kernel(*refs, relu, has_res):
    """Tiled matmul (bf16 operands, f32 acc) + bias (+ residual) + optional ReLU."""
    if has_res:
        a_ref, b_ref, c_ref, r_ref, o_ref, acc_ref = refs
    else:
        a_ref, b_ref, c_ref, o_ref, acc_ref = refs
        r_ref = None
    k = pl.program_id(2)

    @pl.when(k == 0)
    def _():
        acc_ref[...] = jnp.zeros_like(acc_ref)

    acc_ref[...] += jnp.dot(a_ref[...], b_ref[...],
                            preferred_element_type=jnp.float32)

    @pl.when(k == pl.num_programs(2) - 1)
    def _():
        y = acc_ref[...] + c_ref[...]
        if has_res:
            y = y + r_ref[...].astype(jnp.float32)
        if relu:
            y = jnp.maximum(y, 0.0)
        o_ref[...] = y.astype(o_ref.dtype)


def matmul_affine(a, b, bias, *, relu=False, res=None, out_dtype=jnp.float32):
    """out = maybe_relu(a @ b + bias [+ res]).

    a:[M,K], b:[K,N] (BN scale already folded into b), bias:[N], res:[M,N]|None.
    Operands are cast to bf16; accumulation and epilogue are f32.
    """
    M, K = a.shape
    K2, N = b.shape
    assert K == K2

    # MXU-aligned adaptive tiles; clamp tm so tiny M (deep layers / FC) is not
    # padded all the way to 128/256.
    tm = min(256, _round_up(M, 16))
    tn = min(256, _round_up(N, 128))
    tk = min(512, _round_up(K, 128))
    Mp, Kp, Np = _round_up(M, tm), _round_up(K, tk), _round_up(N, tn)

    a_p = jnp.pad(a.astype(jnp.bfloat16), ((0, Mp - M), (0, Kp - K)))
    b_p = jnp.pad(b.astype(jnp.bfloat16), ((0, Kp - K), (0, Np - N)))
    c_p = jnp.pad(bias.astype(jnp.float32).reshape(1, N), ((0, 0), (0, Np - N)))

    inputs = [a_p, b_p, c_p]
    in_specs = [
        pl.BlockSpec((tm, tk), lambda i, j, k: (i, k)),
        pl.BlockSpec((tk, tn), lambda i, j, k: (k, j)),
        pl.BlockSpec((1, tn), lambda i, j, k: (0, j)),
    ]
    has_res = res is not None
    if has_res:
        r_p = jnp.pad(res.astype(jnp.bfloat16), ((0, Mp - M), (0, Np - N)))
        inputs.append(r_p)
        in_specs.append(pl.BlockSpec((tm, tn), lambda i, j, k: (i, j)))

    grid = (Mp // tm, Np // tn, Kp // tk)
    out = pl.pallas_call(
        functools.partial(_matmul_kernel, relu=relu, has_res=has_res),
        out_shape=jax.ShapeDtypeStruct((Mp, Np), out_dtype),
        grid_spec=pltpu.PrefetchScalarGridSpec(
            num_scalar_prefetch=0,
            grid=grid,
            in_specs=in_specs,
            out_specs=pl.BlockSpec((tm, tn), lambda i, j, k: (i, j)),
            scratch_shapes=[pltpu.VMEM((tm, tn), jnp.float32)],
        ),
        compiler_params=pltpu.CompilerParams(
            dimension_semantics=("parallel", "parallel", "arbitrary"),
            vmem_limit_bytes=VMEM_LIMIT),
    )(*inputs)
    return out[:M, :N]


def _max3_kernel(a_ref, b_ref, c_ref, o_ref):
    o_ref[...] = jnp.maximum(jnp.maximum(a_ref[...], b_ref[...]), c_ref[...])


def _max3_tiled(a, b, c):
    """Elementwise 3-way max of [M, C] tensors, tiled over rows."""
    M, C = a.shape
    tm = min(512, _round_up(M, 16))
    Cp = _round_up(C, 128)
    Mp = _round_up(M, tm)
    pad = lambda t: jnp.pad(t, ((0, Mp - M), (0, Cp - C)))
    out = pl.pallas_call(
        _max3_kernel,
        out_shape=jax.ShapeDtypeStruct((Mp, Cp), a.dtype),
        grid_spec=pltpu.PrefetchScalarGridSpec(
            num_scalar_prefetch=0,
            grid=(Mp // tm,),
            in_specs=[pl.BlockSpec((tm, Cp), lambda i: (i, 0))] * 3,
            out_specs=pl.BlockSpec((tm, Cp), lambda i: (i, 0)),
        ),
        compiler_params=pltpu.CompilerParams(
            dimension_semantics=("parallel",),
            vmem_limit_bytes=VMEM_LIMIT),
    )(pad(a), pad(b), pad(c))
    return out[:M, :C]


def _avgpool_kernel(x_ref, o_ref, *, inv_p):
    p = pl.program_id(0)

    @pl.when(p == 0)
    def _():
        o_ref[...] = jnp.zeros_like(o_ref)

    o_ref[...] += jnp.sum(x_ref[...].astype(jnp.float32), axis=1)

    @pl.when(p == pl.num_programs(0) - 1)
    def _():
        o_ref[...] = o_ref[...] * inv_p


def global_avg_pool(x):
    """AdaptiveAvgPool3d((1,1,1)) + flatten: [N, D, H, W, C] -> [N, C] (f32)."""
    N, D, H, W, C = x.shape
    P = D * H * W
    xr = x.reshape(N, P, C)
    tp = min(512, _round_up(P, 16))
    Pp = _round_up(P, tp)
    Cp = _round_up(C, 128)
    xp = jnp.pad(xr, ((0, 0), (0, Pp - P), (0, Cp - C)))
    out = pl.pallas_call(
        functools.partial(_avgpool_kernel, inv_p=1.0 / P),
        out_shape=jax.ShapeDtypeStruct((N, Cp), jnp.float32),
        grid_spec=pltpu.PrefetchScalarGridSpec(
            num_scalar_prefetch=0,
            grid=(Pp // tp,),
            in_specs=[pl.BlockSpec((N, tp, Cp), lambda p: (0, p, 0))],
            out_specs=pl.BlockSpec((N, Cp), lambda p: (0, 0)),
        ),
        compiler_params=pltpu.CompilerParams(
            dimension_semantics=("arbitrary",),
            vmem_limit_bytes=VMEM_LIMIT),
    )(xp)
    return out[:, :C]


# --------------------------------------------------------------------------
# Conv / pool wrappers (im2col glue in plain JAX, compute in Pallas)
# --------------------------------------------------------------------------

def _conv3d_im2col(x, ksize, stride, padding):
    N, D, H, W, C = x.shape
    kd, kh, kw = ksize
    sd, sh, sw = stride
    pd, ph, pw = padding
    xp = jnp.pad(x, ((0, 0), (pd, pd), (ph, ph), (pw, pw), (0, 0)))
    Do = (D + 2 * pd - kd) // sd + 1
    Ho = (H + 2 * ph - kh) // sh + 1
    Wo = (W + 2 * pw - kw) // sw + 1
    cols = []
    for dz in range(kd):
        for dy in range(kh):
            for dx in range(kw):
                cols.append(xp[:, dz:dz + sd * Do:sd,
                               dy:dy + sh * Ho:sh,
                               dx:dx + sw * Wo:sw, :])
    col = jnp.stack(cols, axis=4)                       # [N,Do,Ho,Wo,KK,C]
    return col.reshape(N * Do * Ho * Wo, kd * kh * kw * C), (N, Do, Ho, Wo)


def conv3d_bn(x, w, bn, *, stride=(1, 1, 1), padding=(0, 0, 0), relu=True,
              res=None):
    """Conv3d(bias=False) + BatchNorm3d(eval) [+ residual] + optional ReLU.

    w: [kd, kh, kw, Cin, Cout], bn: (gamma, beta, running_mean, running_var).
    BN scale is folded into the weights; residual (if given) and ReLU are fused
    into the matmul epilogue. Output activations are bf16.
    """
    kd, kh, kw, cin, cout = w.shape
    cols, (N, Do, Ho, Wo) = _conv3d_im2col(x, (kd, kh, kw), stride, padding)
    gamma, beta, mean, var = bn
    scale = gamma / jnp.sqrt(var + BN_EPS)
    bias = beta - mean * scale
    wm = w.reshape(kd * kh * kw * cin, cout) * scale[None, :]
    res2 = None if res is None else res.reshape(-1, cout)
    y = matmul_affine(cols, wm, bias, relu=relu, res=res2,
                      out_dtype=jnp.bfloat16)
    return y.reshape(N, Do, Ho, Wo, cout)


def _pool1d_max(x, axis, k=3, s=2, p=1):
    """1-D max pool (kernel k, stride s, pad p with -inf) along `axis`."""
    pad_cfg = [(0, 0)] * x.ndim
    pad_cfg[axis] = (p, p)
    xp = jnp.pad(x, pad_cfg, constant_values=-jnp.inf)
    L = x.shape[axis]
    Lo = (L + 2 * p - k) // s + 1
    taps = []
    for off in range(k):
        idx = [slice(None)] * x.ndim
        idx[axis] = slice(off, off + s * (Lo - 1) + 1, s)
        taps.append(xp[tuple(idx)])
    out_shape = taps[0].shape
    C = out_shape[-1]
    M = math.prod(out_shape[:-1])
    a, b, c = (t.reshape(M, C) for t in taps)
    out = _max3_tiled(a, b, c)
    return out.reshape(out_shape)


def maxpool3d(x, ksize=3, stride=2, padding=1):
    """MaxPool3d(k=3, s=2, p=1), separable over D, H, W (no 27x copy)."""
    for axis in (1, 2, 3):
        x = _pool1d_max(x, axis, k=ksize, s=stride, p=padding)
    return x


# --------------------------------------------------------------------------
# Parameters (deterministic in-script init, PyTorch-default BN stats)
# --------------------------------------------------------------------------

def _init_conv(key, kd, kh, kw, cin, cout):
    fan_in = kd * kh * kw * cin
    return (jax.random.normal(key, (kd, kh, kw, cin, cout), jnp.float32)
            * jnp.sqrt(2.0 / fan_in))


def _init_bn(c):
    return (jnp.ones((c,), jnp.float32), jnp.zeros((c,), jnp.float32),
            jnp.zeros((c,), jnp.float32), jnp.ones((c,), jnp.float32))


def build_params(key, layers, num_classes=14):
    keys = iter(jax.random.split(key, 4096))
    params = {
        "conv1": _init_conv(next(keys), 3, 7, 7, 3, 64),
        "bn1": _init_bn(64),
    }
    in_c = 64
    for li, (ch, nblocks, stride) in enumerate(
            zip([64, 128, 256, 512], layers, [1, 2, 2, 2]), start=1):
        blocks = []
        for b in range(nblocks):
            s = stride if b == 0 else 1
            blk = {
                "stride": s,
                "conv1": _init_conv(next(keys), 1, 1, 1, in_c, ch),
                "bn1": _init_bn(ch),
                "conv2": _init_conv(next(keys), 3, 3, 3, ch, ch),
                "bn2": _init_bn(ch),
                "conv3": _init_conv(next(keys), 1, 1, 1, ch, ch * EXPANSION),
                "bn3": _init_bn(ch * EXPANSION),
            }
            if s != 1 or in_c != ch * EXPANSION:
                blk["ds_conv"] = _init_conv(next(keys), 1, 1, 1, in_c,
                                            ch * EXPANSION)
                blk["ds_bn"] = _init_bn(ch * EXPANSION)
            blocks.append(blk)
            in_c = ch * EXPANSION
        params[f"layer{li}"] = blocks
    params["fc_w"] = (jax.random.normal(next(keys),
                                        (512 * EXPANSION, num_classes),
                                        jnp.float32)
                      / jnp.sqrt(512.0 * EXPANSION))
    params["fc_b"] = jnp.zeros((num_classes,), jnp.float32)
    return params


# --------------------------------------------------------------------------
# Forward pass
# --------------------------------------------------------------------------

def bottleneck_forward(x, blk):
    s = blk["stride"]
    if "ds_conv" in blk:
        identity = conv3d_bn(x, blk["ds_conv"], blk["ds_bn"],
                             stride=(s, s, s), relu=False)
    else:
        identity = x
    out = conv3d_bn(x, blk["conv1"], blk["bn1"], relu=True)
    out = conv3d_bn(out, blk["conv2"], blk["bn2"],
                    stride=(s, s, s), padding=(1, 1, 1), relu=True)
    # residual add + ReLU fused into the conv3 matmul epilogue
    out = conv3d_bn(out, blk["conv3"], blk["bn3"], relu=True, res=identity)
    return out


def resnet3d_forward(x_ncdhw, params):
    # NCDHW (PyTorch) -> NDHWC, bf16 activations throughout
    x = jnp.transpose(x_ncdhw, (0, 2, 3, 4, 1)).astype(jnp.bfloat16)
    x = conv3d_bn(x, params["conv1"], params["bn1"],
                  stride=(1, 2, 2), padding=(1, 3, 3), relu=True)
    x = maxpool3d(x, ksize=3, stride=2, padding=1)
    for li in range(1, 5):
        for blk in params[f"layer{li}"]:
            x = bottleneck_forward(x, blk)
    feat = global_avg_pool(x)                            # [N, 512*expansion] f32
    # TODO(synk): dropout is skipped (use_dropout=False is the module default).
    logits = matmul_affine(feat, params["fc_w"], params["fc_b"],
                           relu=False, out_dtype=jnp.float32)
    return logits


# --------------------------------------------------------------------------

if __name__ == "__main__":
    key = jax.random.PRNGKey(0)
    k_x, k_p = jax.random.split(key)

    # Small but shape-consistent config: ResNet101 would be layers=[3,4,23,3];
    # we instantiate the same architecture with layers=[1,1,1,1] for the demo.
    layers = [1, 1, 1, 1]
    num_classes = 14

    # Input in PyTorch layout NCDHW: batch=2, C=3, T=4, H=W=32.
    x = jax.random.normal(k_x, (2, 3, 4, 32, 32), jnp.float32)

    params = build_params(k_p, layers, num_classes=num_classes)
    logits = resnet3d_forward(x, params)
    logits = jax.block_until_ready(logits)

    assert logits.shape == (2, num_classes), logits.shape
    assert bool(jnp.all(jnp.isfinite(logits)))
    print("KERNEL_OK")
</pallas_src>

<mosaic_0001>
module attributes {stable_mosaic.version = 11 : i64} {
  func.func @_matmul_kernel(%arg0: i32, %arg1: i32, %arg2: i32, %arg3: memref<256x512xbf16, #tpu.memory_space<vmem>>, %arg4: memref<512x128xbf16, #tpu.memory_space<vmem>>, %arg5: memref<1x128xf32, #tpu.memory_space<vmem>>, %arg6: memref<256x128xbf16, #tpu.memory_space<vmem>>, %arg7: memref<256x128xf32, #tpu.memory_space<vmem>>) attributes {dimension_semantics = [#tpu.dimension_semantics<parallel>, #tpu.dimension_semantics<parallel>, #tpu.dimension_semantics<arbitrary>], iteration_bounds = array<i64: 8, 1, 1>, scalar_prefetch = 0 : i64, scratch_operands = 1 : i64, tpu.core_type = #tpu.core_type<tc>, window_params = [{transform_indices = @transform_0, window_bounds = array<i64: 256, 512>}, {transform_indices = @transform_1, window_bounds = array<i64: 512, 128>}, {transform_indices = @transform_2, window_bounds = array<i64: 1, 128>}, {transform_indices = @transform_3, window_bounds = array<i64: 256, 128>}]} {
    %c0_i32 = arith.constant 0 : i32
    %0 = arith.cmpi eq, %arg2, %c0_i32 : i32
    %1 = arith.extui %0 : i1 to i32
    %c0_i32_0 = arith.constant 0 : i32
    %2 = arith.cmpi ne, %1, %c0_i32_0 : i32
    scf.if %2 {
      %cst_10 = arith.constant 0.000000e+00 : f32
      %12 = vector.broadcast %cst_10 : f32 to vector<256x128xf32>
      %c0_11 = arith.constant 0 : index
      %c0_12 = arith.constant 0 : index
      %13 = vector.load %arg7[%c0_11, %c0_12] : memref<256x128xf32, #tpu.memory_space<vmem>>, vector<256x128xf32>
      tpu.vector_store %arg7[%c0_11, %c0_12], %12 {strides = array<i32>} : memref<256x128xf32, #tpu.memory_space<vmem>>, vector<256x128xf32>,
    } else {
    }
    %c0 = arith.constant 0 : index
    %c0_1 = arith.constant 0 : index
    %3 = vector.load %arg7[%c0, %c0_1] : memref<256x128xf32, #tpu.memory_space<vmem>>, vector<256x128xf32>
    %c0_2 = arith.constant 0 : index
    %c0_3 = arith.constant 0 : index
    %4 = vector.load %arg3[%c0_2, %c0_3] : memref<256x512xbf16, #tpu.memory_space<vmem>>, vector<256x512xbf16>
    %c0_4 = arith.constant 0 : index
    %c0_5 = arith.constant 0 : index
    %5 = vector.load %arg4[%c0_4, %c0_5] : memref<512x128xbf16, #tpu.memory_space<vmem>>, vector<512x128xbf16>
    %cst = arith.constant dense<0.000000e+00> : vector<256x128xf32>
    %6 = tpu.matmul %4, %5, %cst {dimension_numbers = #tpu.dot_dimension_numbers<[1], [0], [0], [1], [0, 0, 1, 1], [], []>} : vector<256x512xbf16>, vector<512x128xbf16>, vector<256x128xf32> -> vector<256x128xf32>
    %7 = arith.addf %3, %6 : vector<256x128xf32>
    %c0_6 = arith.constant 0 : index
    %c0_7 = arith.constant 0 : index
    %8 = vector.load %arg7[%c0_6, %c0_7] : memref<256x128xf32, #tpu.memory_space<vmem>>, vector<256x128xf32>
    tpu.vector_store %arg7[%c0_6, %c0_7], %7 {strides = array<i32>} : memref<256x128xf32, #tpu.memory_space<vmem>>, vector<256x128xf32>,
    %c0_i32_8 = arith.constant 0 : i32
    %9 = arith.cmpi eq, %arg2, %c0_i32_8 : i32
    %10 = arith.extui %9 : i1 to i32
    %c0_i32_9 = arith.constant 0 : i32
    %11 = arith.cmpi ne, %10, %c0_i32_9 : i32
    scf.if %11 {
      %c0_10 = arith.constant 0 : index
      %c0_11 = arith.constant 0 : index
      %12 = vector.load %arg7[%c0_10, %c0_11] : memref<256x128xf32, #tpu.memory_space<vmem>>, vector<256x128xf32>
      %c0_12 = arith.constant 0 : index
      %c0_13 = arith.constant 0 : index
      %13 = vector.load %arg5[%c0_12, %c0_13] : memref<1x128xf32, #tpu.memory_space<vmem>>, vector<1x128xf32>
      %14 = vector.broadcast %13 : vector<1x128xf32> to vector<256x128xf32>
      %15 = arith.addf %12, %14 : vector<256x128xf32>
      %cst_14 = arith.constant 0.000000e+00 : f32
      %16 = vector.broadcast %cst_14 : f32 to vector<256x128xf32>
      %17 = arith.maximumf %15, %16 : vector<256x128xf32>
      %18 = arith.truncf %17 : vector<256x128xf32> to vector<256x128xbf16>
      %c0_15 = arith.constant 0 : index
      %c0_16 = arith.constant 0 : index
      %19 = vector.load %arg6[%c0_15, %c0_16] : memref<256x128xbf16, #tpu.memory_space<vmem>>, vector<256x128xbf16>
      tpu.vector_store %arg6[%c0_15, %c0_16], %18 {strides = array<i32>} : memref<256x128xbf16, #tpu.memory_space<vmem>>, vector<256x128xbf16>,
    } else {
    }
    return
  }
  func.func @transform_0(%arg0: i32, %arg1: i32, %arg2: i32) -> (i32, i32) {
    %c0_i32 = arith.constant 0 : i32
    return %arg0, %arg2 : i32, i32
  }
  func.func @transform_1(%arg0: i32, %arg1: i32, %arg2: i32) -> (i32, i32) {
    %c0_i32 = arith.constant 0 : i32
    return %arg2, %arg1 : i32, i32
  }
  func.func @transform_2(%arg0: i32, %arg1: i32, %arg2: i32) -> (i32, i32) {
    %c0_i32 = arith.constant 0 : i32
    %c0_i32_0 = arith.constant 0 : i32
    return %c0_i32, %arg1 : i32, i32
  }
  func.func @transform_3(%arg0: i32, %arg1: i32, %arg2: i32) -> (i32, i32) {
    %c0_i32 = arith.constant 0 : i32
    return %arg0, %arg1 : i32, i32
  }
}

</mosaic_0001>

<bundles_post_ra>
// kernel: tpu_custom_call.1
= control target key start
LH: loop header
LB: loop body
LE: loop exit
PB: predicated region body
PF: predicated region fallthrough
CT: control target
= control target key end

     0   :  { %8 = vsyncpa [#allocation4], 0  ;;  %s3045_s0 = inlined_call_operand.hbm [shape: bf16[2048,512], index: 0, kind: input, shape index: {}]   ;;  %s3046_s1 = inlined_call_operand.hbm [shape: bf16[512,128], index: 1, kind: input, shape index: {}]   ;;  %s3047_s2 = inlined_call_operand.hbm [shape: f32[1,128], index: 2, kind: input, shape index: {}]   ;;  %s3048_s3 = inlined_call_operand.hbm [shape: bf16[2048,128], index: 3, kind: output, shape index: {}]  }
   0x1   :  { %10 = vsyncpa [#allocation4 + $0x1], 0 }
   0x2   :  { %11 = vsyncpa [#allocation7], 0 }
   0x3   :  { %12 = vsyncpa [#allocation5], 0 }
   0x4   :  { %14 = vsyncpa [#allocation5 + $0x1], 0  ;;  %s2678_s12 = smov 0   ;;  %s2680_s13 = smov 0  }
   0x5   :  { %s2682_s14 = smov 0   ;;  %s2684_s15 = smov 0  }
   0x6   :  { %s2686_s16 = smov 0   ;;  %s2688_s17 = smov 0  }
   0x7 LB: > { %s1754_s18 = sadd.s32 4294967295, %s2646_s17   ;;  %s1755_s19 = sadd.s32 4294967294, %s2646_s17   ;;  %s2646_s17 = sphi %s2688_s17, %s20_s17   ;;  %s2642_s16 = sphi %s2686_s16, %s3070_s16   ;;  %s2638_s15 = sphi %s2684_s15, %s3069_s15   ;;  %s2634_s14 = sphi %s2682_s14, %s3068_s14   ;;  %s2630_s13 = sphi %s2680_s13, %s3067_s13   ;;  %s2626_s12 = sphi %s2678_s12, %s3066_s12  }
   0x8   : > { %p61_p0 = scmp.ne.s32.totalorder %s2630_s13, %s2626_s12  ;;  %p2712_p1 = scmp.eq.s32.totalorder %s1754_s18, 0 }
   0x9   : > { %p2716_p2 = scmp.eq.s32.totalorder %s1754_s18, 7  ;;  %p147_p3 = scmp.eq.s32.totalorder %s1755_s19, 7 }
   0xa   : > { %s3053_s20 = scalar_select %p2712_p1, 1, 0 }
   0xb   : > { %s3054_s21 = scalar_select %p2716_p2, 1, 0 }
   0xc   : > { %p2722_p4 = por %p2712_p1, %p61_p0  ;;  %p1756_p5 = scmp.ge.s32.totalorder %s2646_s17, 1 }
   0xd   : > { %p2727_p6 = por %p147_p3, %p61_p0  ;;  %p154_p7 = scmp.lt.s32.totalorder %s2646_s17, 9 }
   0xe   : > { %s3055_s22 = scalar_select %p2722_p4, 1, 0 }
   0xf   : > { %s3056_s23 = scalar_select %p2727_p6, 1, 0 }
  0x10   : > { %p2732_p8 = pnand %p1756_p5, %p154_p7  ;;  %s2648_s25 = smov [#allocation6]  }
  0x11   : > { %s170_s26 = sshll.u32 %s2648_s25, 4  ;;  %s2649_s28 = smov [#allocation8]   ;;  %s171_s26 = int_to_ptr.vmem [resolvable:$true] %s170_s26 }
  0x12   : > { %s3057_s24 = scalar_select %p2732_p8, 1, 0 }
  0x13   : > { %p2269_p9 = pneg %p2732_p8  ;;  %s186_s29 = sshll.u32 %s2649_s28, 4  ;;  %s2744_s29 = int_to_ptr.vmem [resolvable:$true] %s186_s29 }
  0x14   : > { %s2474_s5 = scalar_lea.hbm %s3046_s1, 4096 }
  0x15   : > { %p2740_p10 = pnand %p2269_p9, %p2712_p1  ;;  %p2475_p11 = scmp.ne.s32.totalorder %s3046_s1, %s2474_s5 }
  0x16   : > { %p2481_p3 = scmp.lt.u32.totalorder %s2474_s5, %s3046_s1 }
  0x17   : > { %p2476_p12 = pneg %p2740_p10 }
  0x19   : > { %p2477_p13 = pnand %p2476_p12, %p2475_p11 }
  0x1b   : > { %p2478_p0 = pneg %p2477_p13 }
  0x1d   : > { %p2483_p5 = pnand %p2481_p3, %p2478_p0 }
  0x1f   : > { %2486 = shalt.err (!%p2483_p5)
}
  0x20   : > { %s2487_s10 = scalar_lea.vmem %s171_s26, 4096  ;;  %p2495_p1 = scmp.lt.s32.totalorder %s171_s26, %s171_s26 }
  0x21   : > { %p2488_p7 = scmp.ne.s32.totalorder %s171_s26, %s2487_s10  ;;  %p2496_p4 = scmp.lt.s32.totalorder %s2487_s10, %s2487_s10 }
  0x23   : > { %p2490_p9 = pnand %p2488_p7, %p2476_p12  ;;  %p2497_p8 = por %p2496_p4, %p2495_p1 }
  0x25   : > { %p2491_p6 = pneg %p2490_p9 }
  0x27   : > { %p2498_p2 = pnand %p2497_p8, %p2491_p6 }
  0x29   : > { %2501 = shalt.err (!%p2498_p2)
}
  0x2a   : > { %s2650_s11 = smov 64   ;;  %s2651_s18 = smov 4  }
  0x2b   : > { %2272 = dma.hbm_to_vmem [thread:$0]  (!%p2740_p10), %s3046_s1, 4096, %s171_s26, [#allocation7], %s2650_s11, %s2650_s11, %s2651_s18  }
  0x2c   : > { %s2502_s4 = scalar_lea.hbm %s3047_s2, 16 }
  0x2d   : > { %p2503_p11 = scmp.ne.s32.totalorder %s3047_s2, %s2502_s4  ;;  %p2509_p4 = scmp.lt.u32.totalorder %s2502_s4, %s3047_s2 }
  0x2f   : > { %p2505_p1 = pnand %p2503_p11, %p2476_p12 }
  0x31   : > { %p2506_p2 = pneg %p2505_p1 }
  0x33   : > { %p2511_p6 = pnand %p2509_p4, %p2506_p2 }
  0x35   : > { %2514 = shalt.err (!%p2511_p6)
}
  0x36   : > { %s2515_s26 = scalar_lea.vmem %s2744_s29, 16  ;;  %s2522_s9 = scalar_lea.vmem %s2744_s29, 32 }
  0x37   : > { %p2516_p8 = scmp.ne.s32.totalorder %s2744_s29, %s2515_s26  ;;  %p2523_p3 = scmp.lt.s32.totalorder %s2744_s29, %s2744_s29 }
  0x38   : > { %p2524_p5 = scmp.lt.s32.totalorder %s2522_s9, %s2515_s26 }
  0x39   : > { %p2518_p13 = pnand %p2516_p8, %p2476_p12 }
  0x3a   : > { %p2525_p7 = por %p2524_p5, %p2523_p3 }
  0x3b   : > { %p2519_p0 = pneg %p2518_p13 }
  0x3d   : > { %p2526_p9 = pnand %p2525_p7, %p2519_p0 }
  0x3f   : > { %2529 = shalt.err (!%p2526_p9)
}
  0x40   : > { %2275 = dma.hbm_to_vmem [thread:$0]  (!%p2740_p10), %s3047_s2, 16, %s2744_s29, [#allocation7]  }
  0x41   : > { %s39_s18 = sadd.s32 1, %s2642_s16  ;;  %s48_s19 = sadd.s32 1, %s2634_s14 }
  0x42   : > { %p41_p12 = scmp.ge.s32.totalorder %s39_s18, 8  ;;  %p55_p11 = scmp.ne.s32.totalorder %s2634_s14, %s2630_s13 }
  0x43   : > { %p56_p1 = scmp.eq.s32.totalorder %s2646_s17, 0  ;;  %p2286_p2 = scmp.lt.s32.totalorder %s2646_s17, 8 }
  0x44   : > { %s3072_s18 = smov (%p41_p12, %s39_s18), 0  ;;  %p3059_p6 = scmp.ne.s32.totalorder %s3054_s21, 0 }
  0x45   : > { %p57_p4 = por %p56_p1, %p55_p11  ;;  %s43_s25 = ssub.s32 %s2642_s16, %s3072_s18 }
  0x46   : > { %p2804_p8 = por %p3059_p6, %p55_p11  ;;  %s197_s28 = sand.u32 1, %s2634_s14  }
  0x47   : > { %p46_p13 = scmp.eq.s32.totalorder %s43_s25, 0  ;;  %s1760_s29 = sshll.u32 %s197_s28, 9 }
  0x48   : > { %s1904_s30 = sshll.u32 %s2642_s16, 13  ;;  %s201_s21 = scalar_lea.vmem [#allocation3], %s1760_s29 }
  0x49   : > { %s2813_s4 = scalar_select %p46_p13, %s2634_s14, %s48_s19  }
  0x4a   : > { %s2818_s7 = scalar_lea.hbm %s3045_s0, %s1904_s30  ;;  %s211_s8 = sshll.u32 %s201_s21, 4  ;;  %s2826_s8 = int_to_ptr.vmem [resolvable:$true] %s211_s8 }
  0x4b   : > { %p2822_p10 = pnand %p2286_p2, %p57_p4  ;;  %s2828_s9 = scalar_lea.sflag [#allocation4], %s197_s28 }
  0x4c   : > { %s2530_s10 = scalar_lea.hbm %s2818_s7, 8192  ;;  %s2535_s25 = scalar_lea.hbm %s3045_s0, 65536 }
  0x4d   : > { %p2531_p0 = scmp.ne.s32.totalorder %s2818_s7, %s2530_s10  ;;  %p2532_p3 = pneg %p2822_p10 }
  0x4e   : > { %p2536_p9 = scmp.lt.u32.totalorder %s2818_s7, %s3045_s0  ;;  %p2537_p12 = scmp.lt.u32.totalorder %s2535_s25, %s2530_s10 }
  0x4f   : > { %p2533_p5 = pnand %p2532_p3, %p2531_p0  ;;  %p2539_p1 = scmp.lt.u32.totalorder %s2530_s10, %s2818_s7 }
  0x50   : > { %p2538_p11 = por %p2537_p12, %p2536_p9 }
  0x51   : > { %p2534_p7 = pneg %p2533_p5 }
  0x52   : > { %p2540_p2 = por %p2539_p1, %p2538_p11 }
  0x54   : > { %p2541_p4 = pnand %p2540_p2, %p2534_p7 }
  0x56   : > { %2544 = shalt.err (!%p2541_p4)
}
  0x57   : > { %s2545_s28 = scalar_lea.vmem %s2826_s8, 8192  ;;  %s2652_s5 = smov [#allocation3]  }
  0x58   : > { %p2546_p6 = scmp.ne.s32.totalorder %s2826_s8, %s2545_s28  ;;  %s2550_s6 = sshll.u32 %s2652_s5, 4  ;;  %s2551_s6 = int_to_ptr.vmem [resolvable:$false] %s2550_s6 }
  0x59   : > { %s2552_s21 = scalar_lea.vmem %s2551_s6, 16384  ;;  %p2553_p5 = scmp.lt.s32.totalorder %s2826_s8, %s2551_s6 }
  0x5a   : > { %p2548_p13 = pnand %p2546_p6, %p2532_p3  ;;  %p2554_p9 = scmp.lt.s32.totalorder %s2552_s21, %s2545_s28 }
  0x5c   : > { %p2549_p0 = pneg %p2548_p13  ;;  %p2555_p12 = por %p2554_p9, %p2553_p5 }
  0x5e   : > { %p2556_p11 = pnand %p2555_p12, %p2549_p0 }
  0x60   : > { %2559 = shalt.err (!%p2556_p11)
}
  0x61   : > { %s2653_s10 = smov 256   ;;  %s2654_s11 = smov 16  }
  0x62   : > { %2279 = dma.hbm_to_vmem [thread:$0]  (!%p2822_p10), %s2818_s7, 8192, %s2826_s8, %s2828_s9, %s2653_s10, %s2653_s10, %s2654_s11  }
  0x63   : > { %p3062_p3 = scmp.ne.s32.totalorder %s3057_s24, 0 }
  0x64   : > { %s2859_s19 = sand.u32 (!%p3062_p3), 1, %s2630_s13   ;;  %p3063_p7 = scmp.ne.s32.totalorder (!%p3062_p3), %s3055_s22, 0 }
  0x65   : > { %223 = sbr.rel (%p3062_p3) target bundleno = 507 (0x1fb), region = 32  ;;  %s1765_s25 = sshll.u32 (!%p3062_p3), %s2859_s19, 9 }
  0x66   : > { %s226_s29 = scalar_lea.sflag (!%p3062_p3), [#allocation4], %s2859_s19  ;;  %s2863_s30 = scalar_lea.vmem (!%p3062_p3), [#allocation3], %s1765_s25 }
  0x6c   : > { %2613 = dma.done.wait (%p3063_p7), %s226_s29, 8192  }
  0x6d   : > { %2615 = vsyncadd (%p3063_p7), %s226_s29, 4294959104  ;;  %p3064_p10 = scmp.ne.s32.totalorder %s3053_s20, 0 }
  0x6f   : > { %2617 = dma.done.wait (%p3064_p10), [#allocation7], 4112  }
  0x70   : > { %2619 = vsyncadd (%p3064_p10), [#allocation7], 4294963184  ;;  %v2346_v0 = vld [vmem:[#allocation6 + $0x40] sm:$0xff]   ;;  %v2350_v4 = vld [vmem:[#allocation6 + $0x48] sm:$0xff]   ;;  %s1768_s20 = sshll.u32 %s2859_s19, 7  ;;  %s1937_s24 = sshll.u32 %s2638_s15, 11 }
  0x71   : > { %v2347_v1 = vld [vmem:[#allocation6 + $0xc0] sm:$0xff]   ;;  %2033 = vmatprep.subr.bf16.mxu0 %v2346_v0  ;;  %v2351_v5 = vld [vmem:[#allocation6 + $0xc8] sm:$0xff]   ;;  %v2354_v8 = vld [vmem:[#allocation6 + $0x50] sm:$0xff]   ;;  %s2942_s22 = scalar_lea.vmem [#allocation9], %s1768_s20  ;;  %s2994_s9 = scalar_lea.hbm %s3048_s3, %s1937_s24 }
  0x72   : > { %v2348_v2 = vld [vmem:[#allocation6] sm:$0xff]   ;;  %2145 = vmatprep.subr.bf16.mxu1 %v2347_v1  ;;  %v2352_v6 = vld [vmem:[#allocation6 + $0x8] sm:$0xff]   ;;  %v2355_v9 = vld [vmem:[#allocation6 + $0xd0] sm:$0xff]   ;;  %s1640_s7 = sshll.u32 %s2942_s22, 4  ;;  %s1626_s28 = scalar_lea.sflag [#allocation5], %s2859_s19  ;;  %s2996_s7 = int_to_ptr.vmem [resolvable:$true] %s1640_s7 }
  0x73   : > { %v2349_v3 = vld [vmem:[#allocation6 + $0x80] sm:$0xff]   ;;  %2034 = vmatpush3.bf16.msra.mxu0 %v2348_v2  ;;  %v2353_v7 = vld [vmem:[#allocation6 + $0x88] sm:$0xff]   ;;  %v2356_v10 = vld [vmem:[#allocation6 + $0x10] sm:$0xff]   ;;  %s2560_s5 = scalar_lea.vmem %s2996_s7, 2048  ;;  %s2655_s15 = smov [#allocation9]  }
  0x74   : > { %2146 = vmatpush3.bf16.msra.mxu1 %v2349_v3  ;;  %2035 = vmatprep.subr.bf16.mxu0 %v2350_v4  ;;  %v2357_v11 = vld [vmem:[#allocation6 + $0x90] sm:$0xff]   ;;  %v2358_v12 = vld [vmem:[#allocation6 + $0x58] sm:$0xff]   ;;  %v2362_v16 = vld [vmem:[#allocation6 + $0x60] sm:$0xff]   ;;  %p2561_p1 = scmp.ne.s32.totalorder %s2996_s7, %s2560_s5  ;;  %s2564_s6 = sshll.u32 %s2655_s15, 4  ;;  %s2565_s6 = int_to_ptr.vmem [resolvable:$false] %s2564_s6 }
  0x75   : > { %2147 = vmatprep.subr.bf16.mxu1 %v2351_v5  ;;  %v2359_v13 = vld [vmem:[#allocation6 + $0xd8] sm:$0xff]   ;;  %v2363_v17 = vld [vmem:[#allocation6 + $0xe0] sm:$0xff]   ;;  %v2366_v20 = vld [vmem:[#allocation6 + $0x68] sm:$0xff]   ;;  %s2566_s21 = scalar_lea.vmem %s2565_s6, 4096  ;;  %p2567_p6 = scmp.lt.s32.totalorder %s2996_s7, %s2565_s6 }
  0x76   : > { %v2360_v14 = vld [vmem:[#allocation6 + $0x18] sm:$0xff]   ;;  %v2364_v18 = vld [vmem:[#allocation6 + $0x20] sm:$0xff]   ;;  %v2367_v21 = vld [vmem:[#allocation6 + $0xe8] sm:$0xff]   ;;  %p2562_p2 = pnand %p2561_p1, %p2804_p8  ;;  %p2568_p13 = scmp.lt.s32.totalorder %s2566_s21, %s2560_s5 }
  0x77   : > { %2036 = vmatpush3.bf16.msra.mxu0 %v2352_v6  ;;  %v2361_v15 = vld [vmem:[#allocation6 + $0x98] sm:$0xff]   ;;  %v2365_v19 = vld [vmem:[#allocation6 + $0xa0] sm:$0xff]   ;;  %v2368_v22 = vld [vmem:[#allocation6 + $0x28] sm:$0xff]  }
  0x78   : > { %2148 = vmatpush3.bf16.msra.mxu1 %v2353_v7  ;;  %2037 = vmatprep.subr.bf16.mxu0 %v2354_v8  ;;  %v2369_v23 = vld [vmem:[#allocation6 + $0xa8] sm:$0xff]   ;;  %v2370_v24 = vld [vmem:[#allocation6 + $0x70] sm:$0xff]   ;;  %v2374_v28 = vld [vmem:[#allocation6 + $0x78] sm:$0xff]   ;;  %p2563_p4 = pneg %p2562_p2  ;;  %p2569_p0 = por %p2568_p13, %p2567_p6 }
  0x79   : > { %2149 = vmatprep.subr.bf16.mxu1 %v2355_v9  ;;  %v2371_v25 = vld [vmem:[#allocation6 + $0xf0] sm:$0xff]   ;;  %v2375_v29 = vld [vmem:[#allocation6 + $0xf8] sm:$0xff]  }
  0x7a   : > { %v2372_v26 = vld [vmem:[#allocation6 + $0x30] sm:$0xff]   ;;  %v2376_v30 = vld [vmem:[#allocation6 + $0x38] sm:$0xff]   ;;  %p2570_p5 = pnand %p2569_p0, %p2563_p4 }
  0x7b   : > { %2038 = vmatpush3.bf16.msra.mxu0 %v2356_v10  ;;  %v2373_v27 = vld [vmem:[#allocation6 + $0xb0] sm:$0xff]   ;;  %v2377_v31 = vld [vmem:[#allocation6 + $0xb8] sm:$0xff]  }
  0x7c   : > { %2150 = vmatpush3.bf16.msra.mxu1 %v2357_v11  ;;  %2039 = vmatprep.subr.bf16.mxu0 %v2358_v12  ;;  %v2378_v32 = vld [vmem:[%s2863_s30] ss:$16 sps:$4 sm:$0xff]   ;;  %v2380_v33 = vld [vmem:[%s2863_s30 + $0x4] ss:$16 sps:$4 sm:$0xff]   ;;  %v2381_v34 = vld [vmem:[%s2863_s30 + $0x8] ss:$16 sps:$4 sm:$0xff]  }
  0x7d   : > { %2151 = vmatprep.subr.bf16.mxu1 %v2359_v13  ;;  %v2383_v35 = vld [vmem:[%s2863_s30 + $0xc] ss:$16 sps:$4 sm:$0xff]   ;;  %1005 = vmatprep.mubr.bf16.mxu0 %v2380_v33  ;;  %v2384_v36 = vld [vmem:[%s2863_s30 + $0x24] ss:$16 sps:$4 sm:$0xff]   ;;  %v2388_v38 = vld [vmem:[%s2863_s30 + $0x20] ss:$16 sps:$4 sm:$0xff]  }
  0x7e   : > { %1166 = vmatprep.mubr.bf16.mxu1 %v2383_v35  ;;  %v2386_v37 = vld [vmem:[%s2863_s30 + $0x2c] ss:$16 sps:$4 sm:$0xff]   ;;  %v2389_v39 = vld [vmem:[%s2863_s30 + $0x28] ss:$16 sps:$4 sm:$0xff]   ;;  %v2390_v40 = vld [vmem:[%s2863_s30 + $0x44] ss:$16 sps:$4 sm:$0xff]  }
  0x7f   : > { %2040 = vmatpush3.bf16.msra.mxu0 %v2360_v14  ;;  %v2392_v41 = vld [vmem:[%s2863_s30 + $0x4c] ss:$16 sps:$4 sm:$0xff]   ;;  %v2394_v42 = vld [vmem:[%s2863_s30 + $0x40] ss:$16 sps:$4 sm:$0xff]   ;;  %v2395_v43 = vld [vmem:[%s2863_s30 + $0x48] ss:$16 sps:$4 sm:$0xff]  }
  0x80   : > { %2152 = vmatpush3.bf16.msra.mxu1 %v2361_v15  ;;  %2041 = vmatprep.subr.bf16.mxu0 %v2362_v16  ;;  %v2396_v44 = vld [vmem:[%s2863_s30 + $0x64] ss:$16 sps:$4 sm:$0xff]   ;;  %v2398_v45 = vld [vmem:[%s2863_s30 + $0x6c] ss:$16 sps:$4 sm:$0xff]   ;;  %v2400_v46 = vld [vmem:[%s2863_s30 + $0x60] ss:$16 sps:$4 sm:$0xff]  }
  0x81   : > { %2153 = vmatprep.subr.bf16.mxu1 %v2363_v17  ;;  %v2401_v47 = vld [vmem:[%s2863_s30 + $0x68] ss:$16 sps:$4 sm:$0xff]   ;;  %v2402_v48 = vld [vmem:[%s2863_s30 + $0x84] ss:$16 sps:$4 sm:$0xff]   ;;  %v2404_v49 = vld [vmem:[%s2863_s30 + $0x8c] ss:$16 sps:$4 sm:$0xff]  }
  0x82   : > { %v2406_v50 = vld [vmem:[%s2863_s30 + $0x80] ss:$16 sps:$4 sm:$0xff]   ;;  %v2407_v51 = vld [vmem:[%s2863_s30 + $0x88] ss:$16 sps:$4 sm:$0xff]   ;;  %v2408_v52 = vld [vmem:[%s2863_s30 + $0xa4] ss:$16 sps:$4 sm:$0xff]  }
  0x83   : > { %2042 = vmatpush3.bf16.msra.mxu0 %v2364_v18  ;;  %v2410_v53 = vld [vmem:[%s2863_s30 + $0xac] ss:$16 sps:$4 sm:$0xff]   ;;  %v2412_v54 = vld [vmem:[%s2863_s30 + $0xa0] ss:$16 sps:$4 sm:$0xff]   ;;  %v2413_v55 = vld [vmem:[%s2863_s30 + $0xa8] ss:$16 sps:$4 sm:$0xff]  }
  0x84   : > { %2154 = vmatpush3.bf16.msra.mxu1 %v2365_v19  ;;  %2043 = vmatprep.subr.bf16.mxu0 %v2366_v20  ;;  %v2414_v56 = vld [vmem:[%s2863_s30 + $0xc4] ss:$16 sps:$4 sm:$0xff]   ;;  %v2416_v57 = vld [vmem:[%s2863_s30 + $0xcc] ss:$16 sps:$4 sm:$0xff]   ;;  %v2418_v58 = vld [vmem:[%s2863_s30 + $0xc0] ss:$16 sps:$4 sm:$0xff]  }
  0x85   : > { %2155 = vmatprep.subr.bf16.mxu1 %v2367_v21  ;;  %v2419_v59 = vld [vmem:[%s2863_s30 + $0xc8] ss:$16 sps:$4 sm:$0xff]   ;;  %v2420_v60 = vld [vmem:[%s2863_s30 + $0xe4] ss:$16 sps:$4 sm:$0xff]   ;;  %v2422_v61 = vld [vmem:[%s2863_s30 + $0xec] ss:$16 sps:$4 sm:$0xff]  }
  0x86   : > { %v2424_v62 = vld [vmem:[%s2863_s30 + $0xe0] ss:$16 sps:$4 sm:$0xff]   ;;  %v2425_v63 = vld [vmem:[%s2863_s30 + $0xe8] ss:$16 sps:$4 sm:$0xff]   ;;  %v2426_v0 = vld [vmem:[%s2863_s30 + $0x104] ss:$16 sps:$4 sm:$0xff]  }
  0x87   : > { %2044 = vmatpush3.bf16.msra.mxu0 %v2368_v22  ;;  %v2428_v1 = vld [vmem:[%s2863_s30 + $0x10c] ss:$16 sps:$4 sm:$0xff]   ;;  %v2430_v2 = vld [vmem:[%s2863_s30 + $0x100] ss:$16 sps:$4 sm:$0xff]   ;;  %v2431_v3 = vld [vmem:[%s2863_s30 + $0x108] ss:$16 sps:$4 sm:$0xff]  }
  0x88   : > { %2156 = vmatpush3.bf16.msra.mxu1 %v2369_v23  ;;  %2045 = vmatprep.subr.bf16.mxu0 %v2370_v24  ;;  %v2432_v4 = vld [vmem:[%s2863_s30 + $0x124] ss:$16 sps:$4 sm:$0xff]   ;;  %v2434_v5 = vld [vmem:[%s2863_s30 + $0x12c] ss:$16 sps:$4 sm:$0xff]   ;;  %v2436_v6 = vld [vmem:[%s2863_s30 + $0x120] ss:$16 sps:$4 sm:$0xff]  }
  0x89   : > { %2157 = vmatprep.subr.bf16.mxu1 %v2371_v25  ;;  %v2437_v7 = vld [vmem:[%s2863_s30 + $0x128] ss:$16 sps:$4 sm:$0xff]   ;;  %v2438_v8 = vld [vmem:[%s2863_s30 + $0x144] ss:$16 sps:$4 sm:$0xff]   ;;  %v2440_v9 = vld [vmem:[%s2863_s30 + $0x14c] ss:$16 sps:$4 sm:$0xff]  }
  0x8a   : > { %v2442_v10 = vld [vmem:[%s2863_s30 + $0x140] ss:$16 sps:$4 sm:$0xff]   ;;  %v2443_v11 = vld [vmem:[%s2863_s30 + $0x148] ss:$16 sps:$4 sm:$0xff]   ;;  %v2444_v12 = vld [vmem:[%s2863_s30 + $0x164] ss:$16 sps:$4 sm:$0xff]  }
  0x8b   : > { %2046 = vmatpush3.bf16.msra.mxu0 %v2372_v26  ;;  %v2446_v13 = vld [vmem:[%s2863_s30 + $0x16c] ss:$16 sps:$4 sm:$0xff]   ;;  %v2448_v14 = vld [vmem:[%s2863_s30 + $0x160] ss:$16 sps:$4 sm:$0xff]   ;;  %v2449_v15 = vld [vmem:[%s2863_s30 + $0x168] ss:$16 sps:$4 sm:$0xff]  }
  0x8c   : > { %2158 = vmatpush3.bf16.msra.mxu1 %v2373_v27  ;;  %2047 = vmatprep.subr.bf16.mxu0 %v2374_v28  ;;  %v2450_v16 = vld [vmem:[%s2863_s30 + $0x184] ss:$16 sps:$4 sm:$0xff]   ;;  %v2452_v17 = vld [vmem:[%s2863_s30 + $0x18c] ss:$16 sps:$4 sm:$0xff]   ;;  %v2454_v18 = vld [vmem:[%s2863_s30 + $0x180] ss:$16 sps:$4 sm:$0xff]  }
  0x8d   : > { %2159 = vmatprep.subr.bf16.mxu1 %v2375_v29  ;;  %v2455_v19 = vld [vmem:[%s2863_s30 + $0x188] ss:$16 sps:$4 sm:$0xff]   ;;  %v2456_v20 = vld [vmem:[%s2863_s30 + $0x1a4] ss:$16 sps:$4 sm:$0xff]   ;;  %v2458_v21 = vld [vmem:[%s2863_s30 + $0x1ac] ss:$16 sps:$4 sm:$0xff]  }
  0x8e   : > { %v2460_v22 = vld [vmem:[%s2863_s30 + $0x1a0] ss:$16 sps:$4 sm:$0xff]   ;;  %v2461_v23 = vld [vmem:[%s2863_s30 + $0x1a8] ss:$16 sps:$4 sm:$0xff]   ;;  %v2462_v24 = vld [vmem:[%s2863_s30 + $0x1c4] ss:$16 sps:$4 sm:$0xff]  }
  0x8f   : > { %2048 = vmatpush3.bf16.msra.mxu0 %v2376_v30  ;;  %v2464_v25 = vld [vmem:[%s2863_s30 + $0x1cc] ss:$16 sps:$4 sm:$0xff]   ;;  %v2466_v26 = vld [vmem:[%s2863_s30 + $0x1c0] ss:$16 sps:$4 sm:$0xff]   ;;  %v2467_v27 = vld [vmem:[%s2863_s30 + $0x1c8] ss:$16 sps:$4 sm:$0xff]  }
  0x90   : > { %2160 = vmatpush3.bf16.msra.mxu1 %v2377_v31  ;;  %v2468_v28 = vld [vmem:[%s2863_s30 + $0x1e4] ss:$16 sps:$4 sm:$0xff]   ;;  %v2470_v29 = vld [vmem:[%s2863_s30 + $0x1ec] ss:$16 sps:$4 sm:$0xff]   ;;  %v2472_v30 = vld [vmem:[%s2863_s30 + $0x1e0] ss:$16 sps:$4 sm:$0xff]  }
  0x91   : > { %v2473_v31 = vld [vmem:[%s2863_s30 + $0x1e8] ss:$16 sps:$4 sm:$0xff]  }
  0x92   : > { %1006 = vmatmul.mubr.bf16.vlgmr.msra.gmra.mrb[0].mxu0 %v2378_v32 }
  0x93   : > { %1167 = vmatmul.mubr.bf16.vlgmr.msra.gmra.mrb[0].mxu1 %v2381_v34  ;;  %1013 = vmatprep.mubr.bf16.mxu0 %v2384_v36 }
  0x94   : > { %1174 = vmatprep.mubr.bf16.mxu1 %v2386_v37 }
  0x9a   : > { %1014 = vmatmul.mubr.bf16.gmra.mrb[4].mxu0 %v2388_v38 }
  0x9b   : > { %1175 = vmatmul.mubr.bf16.gmra.mrb[4].mxu1 %v2389_v39  ;;  %1021 = vmatprep.mubr.bf16.mxu0 %v2390_v40 }
  0x9c   : > { %1182 = vmatprep.mubr.bf16.mxu1 %v2392_v41  ;;  %v2937_v41 = vld [vmem:[#allocation8] ss:$0 sm:$0xff] }
  0xa2   : > { %1022 = vmatmul.mubr.bf16.gmra.mrb[8].mxu0 %v2394_v42 }
  0xa3   : > { %1183 = vmatmul.mubr.bf16.gmra.mrb[8].mxu1 %v2395_v43  ;;  %1029 = vmatprep.mubr.bf16.mxu0 %v2396_v44 }
  0xa4   : > { %1190 = vmatprep.mubr.bf16.mxu1 %v2398_v45 }
  0xaa   : > { %1030 = vmatmul.mubr.bf16.gmra.mrb[12].mxu0 %v2400_v46 }
  0xab   : > { %1191 = vmatmul.mubr.bf16.gmra.mrb[12].mxu1 %v2401_v47  ;;  %1037 = vmatprep.mubr.bf16.mxu0 %v2402_v48 }
  0xac   : > { %1198 = vmatprep.mubr.bf16.mxu1 %v2404_v49 }
  0xb2   : > { %1038 = vmatmul.mubr.bf16.gmra.mrb[16].mxu0 %v2406_v50 }
  0xb3   : > { %1199 = vmatmul.mubr.bf16.gmra.mrb[16].mxu1 %v2407_v51  ;;  %1045 = vmatprep.mubr.bf16.mxu0 %v2408_v52 }
  0xb4   : > { %1206 = vmatprep.mubr.bf16.mxu1 %v2410_v53 }
  0xba   : > { %1046 = vmatmul.mubr.bf16.gmra.mrb[20].mxu0 %v2412_v54 }
  0xbb   : > { %1207 = vmatmul.mubr.bf16.gmra.mrb[20].mxu1 %v2413_v55  ;;  %1053 = vmatprep.mubr.bf16.mxu0 %v2414_v56 }
  0xbc   : > { %1214 = vmatprep.mubr.bf16.mxu1 %v2416_v57 }
  0xc2   : > { %1054 = vmatmul.mubr.bf16.gmra.mrb[24].mxu0 %v2418_v58 }
  0xc3   : > { %1215 = vmatmul.mubr.bf16.gmra.mrb[24].mxu1 %v2419_v59  ;;  %1061 = vmatprep.mubr.bf16.mxu0 %v2420_v60 }
  0xc4   : > { %1222 = vmatprep.mubr.bf16.mxu1 %v2422_v61 }
  0xca   : > { %1062 = vmatmul.mubr.bf16.gmra.mrb[28].mxu0 %v2424_v62 }
  0xcb   : > { %1223 = vmatmul.mubr.bf16.gmra.mrb[28].mxu1 %v2425_v63  ;;  %1069 = vmatprep.mubr.bf16.mxu0 %v2426_v0 }
  0xcc   : > { %1230 = vmatprep.mubr.bf16.mxu1 %v2428_v1 }
  0xd2   : > { %1070 = vmatmul.mubr.bf16.gmra.mrb[32].mxu0 %v2430_v2 }
  0xd3   : > { %1231 = vmatmul.mubr.bf16.gmra.mrb[32].mxu1 %v2431_v3  ;;  %1077 = vmatprep.mubr.bf16.mxu0 %v2432_v4 }
  0xd4   : > { %1238 = vmatprep.mubr.bf16.mxu1 %v2434_v5 }
  0xda   : > { %1078 = vmatmul.mubr.bf16.gmra.mrb[36].mxu0 %v2436_v6 }
  0xdb   : > { %1239 = vmatmul.mubr.bf16.gmra.mrb[36].mxu1 %v2437_v7  ;;  %1085 = vmatprep.mubr.bf16.mxu0 %v2438_v8 }
  0xdc   : > { %1246 = vmatprep.mubr.bf16.mxu1 %v2440_v9 }
  0xe2   : > { %1086 = vmatmul.mubr.bf16.gmra.mrb[40].mxu0 %v2442_v10 }
  0xe3   : > { %1247 = vmatmul.mubr.bf16.gmra.mrb[40].mxu1 %v2443_v11  ;;  %1093 = vmatprep.mubr.bf16.mxu0 %v2444_v12 }
  0xe4   : > { %1254 = vmatprep.mubr.bf16.mxu1 %v2446_v13 }
  0xea   : > { %1094 = vmatmul.mubr.bf16.gmra.mrb[44].mxu0 %v2448_v14 }
  0xeb   : > { %1255 = vmatmul.mubr.bf16.gmra.mrb[44].mxu1 %v2449_v15  ;;  %1101 = vmatprep.mubr.bf16.mxu0 %v2450_v16 }
  0xec   : > { %1262 = vmatprep.mubr.bf16.mxu1 %v2452_v17 }
  0xf2   : > { %1102 = vmatmul.mubr.bf16.gmra.mrb[48].mxu0 %v2454_v18 }
  0xf3   : > { %1263 = vmatmul.mubr.bf16.gmra.mrb[48].mxu1 %v2455_v19  ;;  %1109 = vmatprep.mubr.bf16.mxu0 %v2456_v20 }
  0xf4   : > { %1270 = vmatprep.mubr.bf16.mxu1 %v2458_v21 }
  0xfa   : > { %1110 = vmatmul.mubr.bf16.gmra.mrb[52].mxu0 %v2460_v22 }
  0xfb   : > { %1271 = vmatmul.mubr.bf16.gmra.mrb[52].mxu1 %v2461_v23  ;;  %1117 = vmatprep.mubr.bf16.mxu0 %v2462_v24 }
  0xfc   : > { %1278 = vmatprep.mubr.bf16.mxu1 %v2464_v25 }
 0x102   : > { %1118 = vmatmul.mubr.bf16.gmra.mrb[56].mxu0 %v2466_v26 }
 0x103   : > { %1279 = vmatmul.mubr.bf16.gmra.mrb[56].mxu1 %v2467_v27  ;;  %1125 = vmatprep.mubr.bf16.mxu0 %v2468_v28 }
 0x104   : > { %1286 = vmatprep.mubr.bf16.mxu1 %v2470_v29 }
 0x10a   : > { %1126 = vmatmul.mubr.bf16.gmra.mrb[60].mxu0 %v2472_v30 }
 0x10b   : > { %1287 = vmatmul.mubr.bf16.gmra.mrb[60].mxu1 %v2473_v31 }
 0x165   : > { %v2049_v32 = vpop.f32.mrb[0].mxu0 }
 0x166   : > { %v2161_v33 = vpop.f32.mrb[0].mxu1  ;;  %v2050_v34 = vpop.f32.mrb[1].mxu0 }
 0x167   : > { %v2051_v35 = vadd.f32 %v2050_v34, %v2049_v32  ;;  %v2162_v36 = vpop.f32.mrb[1].mxu1  ;;  %v2052_v37 = vpop.f32.mrb[2].mxu0 }
 0x168   : > { %v2163_v38 = vadd.f32 %v2162_v36, %v2161_v33  ;;  %v2164_v39 = vpop.f32.mrb[2].mxu1  ;;  %v2053_v40 = vpop.f32.mrb[3].mxu0 }
 0x169   : > { %v2054_v42 = vadd.f32 %v2053_v40, %v2052_v37  ;;  %v2165_v43 = vpop.f32.mrb[3].mxu1 }
 0x16a   : > { %v1169_v44 = vadd.f32 %v2163_v38, %v2051_v35  ;;  %v2166_v45 = vadd.f32 %v2165_v43, %v2164_v39 }
 0x16c   : > { %v1401_v46 = vadd.f32 %v2937_v41, %v1169_v44  ;;  %v1172_v47 = vadd.f32 %v2166_v45, %v2054_v42 }
 0x16d   : > { %v2055_v48 = vpop.f32.mrb[4].mxu0 }
 0x16e   : > { %v1402_v49 = vadd.f32 %v2937_v41, %v1172_v47  ;;  %v2167_v50 = vpop.f32.mrb[4].mxu1  ;;  %v2056_v51 = vpop.f32.mrb[5].mxu0  ;;  %v1433_v55 = vmax.f32 %v1401_v46, 0.0 }
 0x16f   : > { %v2057_v52 = vadd.f32 %v2056_v51, %v2055_v48  ;;  %v2168_v53 = vpop.f32.mrb[5].mxu1  ;;  %v2058_v54 = vpop.f32.mrb[6].mxu0 }
 0x170   : > { %v1434_v56 = vmax.f32 %v1402_v49, 0.0  ;;  %v2169_v57 = vadd.f32 %v2168_v53, %v2167_v50  ;;  %v2170_v58 = vpop.f32.mrb[6].mxu1  ;;  %v2059_v59 = vpop.f32.mrb[7].mxu0 }
 0x171   : > { %v2060_v60 = vadd.f32 %v2059_v59, %v2058_v54  ;;  %v2171_v61 = vpop.f32.mrb[7].mxu1 }
 0x172   : > { %v1941_v62 = vpack.c.bf16 %v1434_v56, %v1433_v55  ;;  %v1177_v63 = vadd.f32 %v2169_v57, %v2057_v52  ;;  %v2172_v0 = vadd.f32 %v2171_v61, %v2170_v58 }
 0x174   : > { %1942 = vst [vmem:[%s2942_s22] sm:$0xff] %v1941_v62   ;;  %v1403_v1 = vadd.f32 %v2937_v41, %v1177_v63  ;;  %v1180_v2 = vadd.f32 %v2172_v0, %v2060_v60 }
 0x175   : > { %v2061_v3 = vpop.f32.mrb[8].mxu0 }
 0x176   : > { %v1404_v4 = vadd.f32 %v2937_v41, %v1180_v2  ;;  %v2173_v5 = vpop.f32.mrb[8].mxu1  ;;  %v2062_v6 = vpop.f32.mrb[9].mxu0  ;;  %v1435_v10 = vmax.f32 %v1403_v1, 0.0 }
 0x177   : > { %v2063_v7 = vadd.f32 %v2062_v6, %v2061_v3  ;;  %v2174_v8 = vpop.f32.mrb[9].mxu1  ;;  %v2064_v9 = vpop.f32.mrb[10].mxu0 }
 0x178   : > { %v1436_v11 = vmax.f32 %v1404_v4, 0.0  ;;  %v2175_v12 = vadd.f32 %v2174_v8, %v2173_v5  ;;  %v2176_v13 = vpop.f32.mrb[10].mxu1  ;;  %v2065_v14 = vpop.f32.mrb[11].mxu0 }
 0x179   : > { %v2066_v15 = vadd.f32 %v2065_v14, %v2064_v9  ;;  %v2177_v16 = vpop.f32.mrb[11].mxu1 }
 0x17a   : > { %v1946_v17 = vpack.c.bf16 %v1436_v11, %v1435_v10  ;;  %v1185_v18 = vadd.f32 %v2175_v12, %v2063_v7  ;;  %v2178_v19 = vadd.f32 %v2177_v16, %v2176_v13 }
 0x17c   : > { %2018 = vst [vmem:[%s2942_s22 + $0x8] sm:$0xff] %v1946_v17   ;;  %v1405_v20 = vadd.f32 %v2937_v41, %v1185_v18  ;;  %v1188_v21 = vadd.f32 %v2178_v19, %v2066_v15 }
 0x17d   : > { %v2067_v22 = vpop.f32.mrb[12].mxu0 }
 0x17e   : > { %v1406_v23 = vadd.f32 %v2937_v41, %v1188_v21  ;;  %v2179_v24 = vpop.f32.mrb[12].mxu1  ;;  %v2068_v25 = vpop.f32.mrb[13].mxu0  ;;  %v1437_v29 = vmax.f32 %v1405_v20, 0.0 }
 0x17f   : > { %v2069_v26 = vadd.f32 %v2068_v25, %v2067_v22  ;;  %v2180_v27 = vpop.f32.mrb[13].mxu1  ;;  %v2070_v28 = vpop.f32.mrb[14].mxu0 }
 0x180   : > { %v1438_v30 = vmax.f32 %v1406_v23, 0.0  ;;  %v2181_v31 = vadd.f32 %v2180_v27, %v2179_v24  ;;  %v2182_v32 = vpop.f32.mrb[14].mxu1  ;;  %v2071_v33 = vpop.f32.mrb[15].mxu0 }
 0x181   : > { %v2072_v34 = vadd.f32 %v2071_v33, %v2070_v28  ;;  %v2183_v35 = vpop.f32.mrb[15].mxu1 }
 0x182   : > { %v1951_v36 = vpack.c.bf16 %v1438_v30, %v1437_v29  ;;  %v1193_v37 = vadd.f32 %v2181_v31, %v2069_v26  ;;  %v2184_v38 = vadd.f32 %v2183_v35, %v2182_v32 }
 0x184   : > { %2019 = vst [vmem:[%s2942_s22 + $0x10] sm:$0xff] %v1951_v36   ;;  %v1407_v39 = vadd.f32 %v2937_v41, %v1193_v37  ;;  %v1196_v40 = vadd.f32 %v2184_v38, %v2072_v34 }
 0x185   : > { %v2073_v42 = vpop.f32.mrb[16].mxu0 }
 0x186   : > { %v1408_v43 = vadd.f32 %v2937_v41, %v1196_v40  ;;  %v2185_v44 = vpop.f32.mrb[16].mxu1  ;;  %v2074_v45 = vpop.f32.mrb[17].mxu0  ;;  %v1439_v49 = vmax.f32 %v1407_v39, 0.0 }
 0x187   : > { %v2075_v46 = vadd.f32 %v2074_v45, %v2073_v42  ;;  %v2186_v47 = vpop.f32.mrb[17].mxu1  ;;  %v2076_v48 = vpop.f32.mrb[18].mxu0 }
 0x188   : > { %v1440_v50 = vmax.f32 %v1408_v43, 0.0  ;;  %v2187_v51 = vadd.f32 %v2186_v47, %v2185_v44  ;;  %v2188_v52 = vpop.f32.mrb[18].mxu1  ;;  %v2077_v53 = vpop.f32.mrb[19].mxu0 }
 0x189   : > { %v2078_v54 = vadd.f32 %v2077_v53, %v2076_v48  ;;  %v2189_v55 = vpop.f32.mrb[19].mxu1 }
 0x18a   : > { %v1956_v56 = vpack.c.bf16 %v1440_v50, %v1439_v49  ;;  %v1201_v57 = vadd.f32 %v2187_v51, %v2075_v46  ;;  %v2190_v58 = vadd.f32 %v2189_v55, %v2188_v52 }
 0x18c   : > { %2020 = vst [vmem:[%s2942_s22 + $0x18] sm:$0xff] %v1956_v56   ;;  %v1409_v59 = vadd.f32 %v2937_v41, %v1201_v57  ;;  %v1204_v60 = vadd.f32 %v2190_v58, %v2078_v54 }
 0x18d   : > { %v2079_v61 = vpop.f32.mrb[20].mxu0 }
 0x18e   : > { %v1410_v62 = vadd.f32 %v2937_v41, %v1204_v60  ;;  %v2191_v63 = vpop.f32.mrb[20].mxu1  ;;  %v2080_v0 = vpop.f32.mrb[21].mxu0  ;;  %v1441_v4 = vmax.f32 %v1409_v59, 0.0 }
 0x18f   : > { %v2081_v1 = vadd.f32 %v2080_v0, %v2079_v61  ;;  %v2192_v2 = vpop.f32.mrb[21].mxu1  ;;  %v2082_v3 = vpop.f32.mrb[22].mxu0 }
 0x190   : > { %v1442_v5 = vmax.f32 %v1410_v62, 0.0  ;;  %v2193_v6 = vadd.f32 %v2192_v2, %v2191_v63  ;;  %v2194_v7 = vpop.f32.mrb[22].mxu1  ;;  %v2083_v8 = vpop.f32.mrb[23].mxu0 }
 0x191   : > { %v2084_v9 = vadd.f32 %v2083_v8, %v2082_v3  ;;  %v2195_v10 = vpop.f32.mrb[23].mxu1 }
 0x192   : > { %v1961_v11 = vpack.c.bf16 %v1442_v5, %v1441_v4  ;;  %v1209_v12 = vadd.f32 %v2193_v6, %v2081_v1  ;;  %v2196_v13 = vadd.f32 %v2195_v10, %v2194_v7 }
 0x194   : > { %2021 = vst [vmem:[%s2942_s22 + $0x20] sm:$0xff] %v1961_v11   ;;  %v1411_v14 = vadd.f32 %v2937_v41, %v1209_v12  ;;  %v1212_v15 = vadd.f32 %v2196_v13, %v2084_v9 }
 0x195   : > { %v2085_v16 = vpop.f32.mrb[24].mxu0 }
 0x196   : > { %v1412_v17 = vadd.f32 %v2937_v41, %v1212_v15  ;;  %v2197_v18 = vpop.f32.mrb[24].mxu1  ;;  %v2086_v19 = vpop.f32.mrb[25].mxu0  ;;  %v1443_v23 = vmax.f32 %v1411_v14, 0.0 }
 0x197   : > { %v2087_v20 = vadd.f32 %v2086_v19, %v2085_v16  ;;  %v2198_v21 = vpop.f32.mrb[25].mxu1  ;;  %v2088_v22 = vpop.f32.mrb[26].mxu0 }
 0x198   : > { %v1444_v24 = vmax.f32 %v1412_v17, 0.0  ;;  %v2199_v25 = vadd.f32 %v2198_v21, %v2197_v18  ;;  %v2200_v26 = vpop.f32.mrb[26].mxu1  ;;  %v2089_v27 = vpop.f32.mrb[27].mxu0 }
 0x199   : > { %v2090_v28 = vadd.f32 %v2089_v27, %v2088_v22  ;;  %v2201_v29 = vpop.f32.mrb[27].mxu1 }
 0x19a   : > { %v1966_v30 = vpack.c.bf16 %v1444_v24, %v1443_v23  ;;  %v1217_v31 = vadd.f32 %v2199_v25, %v2087_v20  ;;  %v2202_v32 = vadd.f32 %v2201_v29, %v2200_v26 }
 0x19c   : > { %2022 = vst [vmem:[%s2942_s22 + $0x28] sm:$0xff] %v1966_v30   ;;  %v1413_v33 = vadd.f32 %v2937_v41, %v1217_v31  ;;  %v1220_v34 = vadd.f32 %v2202_v32, %v2090_v28 }
 0x19d   : > { %v2091_v35 = vpop.f32.mrb[28].mxu0 }
 0x19e   : > { %v1414_v36 = vadd.f32 %v2937_v41, %v1220_v34  ;;  %v2203_v37 = vpop.f32.mrb[28].mxu1  ;;  %v2092_v38 = vpop.f32.mrb[29].mxu0  ;;  %v1445_v43 = vmax.f32 %v1413_v33, 0.0 }
 0x19f   : > { %v2093_v39 = vadd.f32 %v2092_v38, %v2091_v35  ;;  %v2204_v40 = vpop.f32.mrb[29].mxu1  ;;  %v2094_v42 = vpop.f32.mrb[30].mxu0 }
 0x1a0   : > { %v1446_v44 = vmax.f32 %v1414_v36, 0.0  ;;  %v2205_v45 = vadd.f32 %v2204_v40, %v2203_v37  ;;  %v2206_v46 = vpop.f32.mrb[30].mxu1  ;;  %v2095_v47 = vpop.f32.mrb[31].mxu0 }
 0x1a1   : > { %v2096_v48 = vadd.f32 %v2095_v47, %v2094_v42  ;;  %v2207_v49 = vpop.f32.mrb[31].mxu1 }
 0x1a2   : > { %v1971_v50 = vpack.c.bf16 %v1446_v44, %v1445_v43  ;;  %v1225_v51 = vadd.f32 %v2205_v45, %v2093_v39  ;;  %v2208_v52 = vadd.f32 %v2207_v49, %v2206_v46 }
 0x1a4   : > { %2023 = vst [vmem:[%s2942_s22 + $0x30] sm:$0xff] %v1971_v50   ;;  %v1415_v53 = vadd.f32 %v2937_v41, %v1225_v51  ;;  %v1228_v54 = vadd.f32 %v2208_v52, %v2096_v48 }
 0x1a5   : > { %v2097_v55 = vpop.f32.mrb[32].mxu0 }
 0x1a6   : > { %v1416_v56 = vadd.f32 %v2937_v41, %v1228_v54  ;;  %v2209_v57 = vpop.f32.mrb[32].mxu1  ;;  %v2098_v58 = vpop.f32.mrb[33].mxu0  ;;  %v1447_v62 = vmax.f32 %v1415_v53, 0.0 }
 0x1a7   : > { %v2099_v59 = vadd.f32 %v2098_v58, %v2097_v55  ;;  %v2210_v60 = vpop.f32.mrb[33].mxu1  ;;  %v2100_v61 = vpop.f32.mrb[34].mxu0 }
 0x1a8   : > { %v1448_v63 = vmax.f32 %v1416_v56, 0.0  ;;  %v2211_v0 = vadd.f32 %v2210_v60, %v2209_v57  ;;  %v2212_v1 = vpop.f32.mrb[34].mxu1  ;;  %v2101_v2 = vpop.f32.mrb[35].mxu0 }
 0x1a9   : > { %v2102_v3 = vadd.f32 %v2101_v2, %v2100_v61  ;;  %v2213_v4 = vpop.f32.mrb[35].mxu1 }
 0x1aa   : > { %v1976_v5 = vpack.c.bf16 %v1448_v63, %v1447_v62  ;;  %v1233_v6 = vadd.f32 %v2211_v0, %v2099_v59  ;;  %v2214_v7 = vadd.f32 %v2213_v4, %v2212_v1 }
 0x1ac   : > { %2024 = vst [vmem:[%s2942_s22 + $0x38] sm:$0xff] %v1976_v5   ;;  %v1417_v8 = vadd.f32 %v2937_v41, %v1233_v6  ;;  %v1236_v9 = vadd.f32 %v2214_v7, %v2102_v3 }
 0x1ad   : > { %v2103_v10 = vpop.f32.mrb[36].mxu0 }
 0x1ae   : > { %v1418_v11 = vadd.f32 %v2937_v41, %v1236_v9  ;;  %v2215_v12 = vpop.f32.mrb[36].mxu1  ;;  %v2104_v13 = vpop.f32.mrb[37].mxu0  ;;  %v1449_v17 = vmax.f32 %v1417_v8, 0.0 }
 0x1af   : > { %v2105_v14 = vadd.f32 %v2104_v13, %v2103_v10  ;;  %v2216_v15 = vpop.f32.mrb[37].mxu1  ;;  %v2106_v16 = vpop.f32.mrb[38].mxu0 }
 0x1b0   : > { %v1450_v18 = vmax.f32 %v1418_v11, 0.0  ;;  %v2217_v19 = vadd.f32 %v2216_v15, %v2215_v12  ;;  %v2218_v20 = vpop.f32.mrb[38].mxu1  ;;  %v2107_v21 = vpop.f32.mrb[39].mxu0 }
 0x1b1   : > { %v2108_v22 = vadd.f32 %v2107_v21, %v2106_v16  ;;  %v2219_v23 = vpop.f32.mrb[39].mxu1 }
 0x1b2   : > { %v1981_v24 = vpack.c.bf16 %v1450_v18, %v1449_v17  ;;  %v1241_v25 = vadd.f32 %v2217_v19, %v2105_v14  ;;  %v2220_v26 = vadd.f32 %v2219_v23, %v2218_v20 }
 0x1b4   : > { %2025 = vst [vmem:[%s2942_s22 + $0x40] sm:$0xff] %v1981_v24   ;;  %v1419_v27 = vadd.f32 %v2937_v41, %v1241_v25  ;;  %v1244_v28 = vadd.f32 %v2220_v26, %v2108_v22 }
 0x1b5   : > { %v2109_v29 = vpop.f32.mrb[40].mxu0 }
 0x1b6   : > { %v1420_v30 = vadd.f32 %v2937_v41, %v1244_v28  ;;  %v2221_v31 = vpop.f32.mrb[40].mxu1  ;;  %v2110_v32 = vpop.f32.mrb[41].mxu0  ;;  %v1451_v36 = vmax.f32 %v1419_v27, 0.0 }
 0x1b7   : > { %v2111_v33 = vadd.f32 %v2110_v32, %v2109_v29  ;;  %v2222_v34 = vpop.f32.mrb[41].mxu1  ;;  %v2112_v35 = vpop.f32.mrb[42].mxu0 }
 0x1b8   : > { %v1452_v37 = vmax.f32 %v1420_v30, 0.0  ;;  %v2223_v38 = vadd.f32 %v2222_v34, %v2221_v31  ;;  %v2224_v39 = vpop.f32.mrb[42].mxu1  ;;  %v2113_v40 = vpop.f32.mrb[43].mxu0 }
 0x1b9   : > { %v2114_v42 = vadd.f32 %v2113_v40, %v2112_v35  ;;  %v2225_v43 = vpop.f32.mrb[43].mxu1 }
 0x1ba   : > { %v1986_v44 = vpack.c.bf16 %v1452_v37, %v1451_v36  ;;  %v1249_v45 = vadd.f32 %v2223_v38, %v2111_v33  ;;  %v2226_v46 = vadd.f32 %v2225_v43, %v2224_v39 }
 0x1bc   : > { %2026 = vst [vmem:[%s2942_s22 + $0x48] sm:$0xff] %v1986_v44   ;;  %v1421_v47 = vadd.f32 %v2937_v41, %v1249_v45  ;;  %v1252_v48 = vadd.f32 %v2226_v46, %v2114_v42 }
 0x1bd   : > { %v2115_v49 = vpop.f32.mrb[44].mxu0 }
 0x1be   : > { %v1422_v50 = vadd.f32 %v2937_v41, %v1252_v48  ;;  %v2227_v51 = vpop.f32.mrb[44].mxu1  ;;  %v2116_v52 = vpop.f32.mrb[45].mxu0  ;;  %v1453_v56 = vmax.f32 %v1421_v47, 0.0 }
 0x1bf   : > { %v2117_v53 = vadd.f32 %v2116_v52, %v2115_v49  ;;  %v2228_v54 = vpop.f32.mrb[45].mxu1  ;;  %v2118_v55 = vpop.f32.mrb[46].mxu0 }
 0x1c0   : > { %v1454_v57 = vmax.f32 %v1422_v50, 0.0  ;;  %v2229_v58 = vadd.f32 %v2228_v54, %v2227_v51  ;;  %v2230_v59 = vpop.f32.mrb[46].mxu1  ;;  %v2119_v60 = vpop.f32.mrb[47].mxu0 }
 0x1c1   : > { %v2120_v61 = vadd.f32 %v2119_v60, %v2118_v55  ;;  %v2231_v62 = vpop.f32.mrb[47].mxu1 }
 0x1c2   : > { %v1991_v63 = vpack.c.bf16 %v1454_v57, %v1453_v56  ;;  %v1257_v0 = vadd.f32 %v2229_v58, %v2117_v53  ;;  %v2232_v1 = vadd.f32 %v2231_v62, %v2230_v59 }
 0x1c4   : > { %2027 = vst [vmem:[%s2942_s22 + $0x50] sm:$0xff] %v1991_v63   ;;  %v1423_v2 = vadd.f32 %v2937_v41, %v1257_v0  ;;  %v1260_v3 = vadd.f32 %v2232_v1, %v2120_v61 }
 0x1c5   : > { %v2121_v4 = vpop.f32.mrb[48].mxu0 }
 0x1c6   : > { %v1424_v5 = vadd.f32 %v2937_v41, %v1260_v3  ;;  %v2233_v6 = vpop.f32.mrb[48].mxu1  ;;  %v2122_v7 = vpop.f32.mrb[49].mxu0  ;;  %v1455_v11 = vmax.f32 %v1423_v2, 0.0 }
 0x1c7   : > { %v2123_v8 = vadd.f32 %v2122_v7, %v2121_v4  ;;  %v2234_v9 = vpop.f32.mrb[49].mxu1  ;;  %v2124_v10 = vpop.f32.mrb[50].mxu0 }
 0x1c8   : > { %v1456_v12 = vmax.f32 %v1424_v5, 0.0  ;;  %v2235_v13 = vadd.f32 %v2234_v9, %v2233_v6  ;;  %v2236_v14 = vpop.f32.mrb[50].mxu1  ;;  %v2125_v15 = vpop.f32.mrb[51].mxu0 }
 0x1c9   : > { %v2126_v16 = vadd.f32 %v2125_v15, %v2124_v10  ;;  %v2237_v17 = vpop.f32.mrb[51].mxu1 }
 0x1ca   : > { %v1996_v18 = vpack.c.bf16 %v1456_v12, %v1455_v11  ;;  %v1265_v19 = vadd.f32 %v2235_v13, %v2123_v8  ;;  %v2238_v20 = vadd.f32 %v2237_v17, %v2236_v14 }
 0x1cc   : > { %2028 = vst [vmem:[%s2942_s22 + $0x58] sm:$0xff] %v1996_v18   ;;  %v1425_v21 = vadd.f32 %v2937_v41, %v1265_v19  ;;  %v1268_v22 = vadd.f32 %v2238_v20, %v2126_v16 }
 0x1cd   : > { %v2127_v23 = vpop.f32.mrb[52].mxu0 }
 0x1ce   : > { %v1426_v24 = vadd.f32 %v2937_v41, %v1268_v22  ;;  %v2239_v25 = vpop.f32.mrb[52].mxu1  ;;  %v2128_v26 = vpop.f32.mrb[53].mxu0  ;;  %v1457_v30 = vmax.f32 %v1425_v21, 0.0 }
 0x1cf   : > { %v2129_v27 = vadd.f32 %v2128_v26, %v2127_v23  ;;  %v2240_v28 = vpop.f32.mrb[53].mxu1  ;;  %v2130_v29 = vpop.f32.mrb[54].mxu0 }
 0x1d0   : > { %v1458_v31 = vmax.f32 %v1426_v24, 0.0  ;;  %v2241_v32 = vadd.f32 %v2240_v28, %v2239_v25  ;;  %v2242_v33 = vpop.f32.mrb[54].mxu1  ;;  %v2131_v34 = vpop.f32.mrb[55].mxu0 }
 0x1d1   : > { %v2132_v35 = vadd.f32 %v2131_v34, %v2130_v29  ;;  %v2243_v36 = vpop.f32.mrb[55].mxu1 }
 0x1d2   : > { %v2001_v37 = vpack.c.bf16 %v1458_v31, %v1457_v30  ;;  %v1273_v38 = vadd.f32 %v2241_v32, %v2129_v27  ;;  %v2244_v39 = vadd.f32 %v2243_v36, %v2242_v33 }
 0x1d4   : > { %2029 = vst [vmem:[%s2942_s22 + $0x60] sm:$0xff] %v2001_v37   ;;  %v1427_v40 = vadd.f32 %v2937_v41, %v1273_v38  ;;  %v1276_v42 = vadd.f32 %v2244_v39, %v2132_v35 }
 0x1d5   : > { %v2133_v43 = vpop.f32.mrb[56].mxu0 }
 0x1d6   : > { %v1428_v44 = vadd.f32 %v2937_v41, %v1276_v42  ;;  %v2245_v45 = vpop.f32.mrb[56].mxu1  ;;  %v2134_v46 = vpop.f32.mrb[57].mxu0  ;;  %v1459_v50 = vmax.f32 %v1427_v40, 0.0 }
 0x1d7   : > { %v2135_v47 = vadd.f32 %v2134_v46, %v2133_v43  ;;  %v2246_v48 = vpop.f32.mrb[57].mxu1  ;;  %v2136_v49 = vpop.f32.mrb[58].mxu0 }
 0x1d8   : > { %v1460_v51 = vmax.f32 %v1428_v44, 0.0  ;;  %v2247_v52 = vadd.f32 %v2246_v48, %v2245_v45  ;;  %v2248_v53 = vpop.f32.mrb[58].mxu1  ;;  %v2137_v54 = vpop.f32.mrb[59].mxu0 }
 0x1d9   : > { %v2138_v55 = vadd.f32 %v2137_v54, %v2136_v49  ;;  %v2249_v56 = vpop.f32.mrb[59].mxu1 }
 0x1da   : > { %v2006_v57 = vpack.c.bf16 %v1460_v51, %v1459_v50  ;;  %v1281_v58 = vadd.f32 %v2247_v52, %v2135_v47  ;;  %v2250_v59 = vadd.f32 %v2249_v56, %v2248_v53 }
 0x1dc   : > { %2030 = vst [vmem:[%s2942_s22 + $0x68] sm:$0xff] %v2006_v57   ;;  %v1429_v60 = vadd.f32 %v2937_v41, %v1281_v58  ;;  %v1284_v61 = vadd.f32 %v2250_v59, %v2138_v55 }
 0x1dd   : > { %v2139_v62 = vpop.f32.mrb[60].mxu0 }
 0x1de   : > { %v1430_v63 = vadd.f32 %v2937_v41, %v1284_v61  ;;  %v2251_v0 = vpop.f32.mrb[60].mxu1  ;;  %v2140_v1 = vpop.f32.mrb[61].mxu0  ;;  %v1461_v5 = vmax.f32 %v1429_v60, 0.0 }
 0x1df   : > { %v2141_v2 = vadd.f32 %v2140_v1, %v2139_v62  ;;  %v2252_v3 = vpop.f32.mrb[61].mxu1  ;;  %v2142_v4 = vpop.f32.mrb[62].mxu0 }
 0x1e0   : > { %v1462_v6 = vmax.f32 %v1430_v63, 0.0  ;;  %v2253_v7 = vadd.f32 %v2252_v3, %v2251_v0  ;;  %v2254_v8 = vpop.f32.mrb[62].mxu1  ;;  %v2143_v9 = vpop.f32.mrb[63].mxu0 }
 0x1e1   : > { %v2144_v10 = vadd.f32 %v2143_v9, %v2142_v4  ;;  %v2255_v11 = vpop.f32.mrb[63].mxu1 }
 0x1e2   : > { %v2011_v12 = vpack.c.bf16 %v1462_v6, %v1461_v5  ;;  %v1289_v13 = vadd.f32 %v2253_v7, %v2141_v2  ;;  %v2256_v14 = vadd.f32 %v2255_v11, %v2254_v8 }
 0x1e4   : > { %2031 = vst [vmem:[%s2942_s22 + $0x70] sm:$0xff] %v2011_v12   ;;  %v1431_v15 = vadd.f32 %v2937_v41, %v1289_v13  ;;  %v1292_v16 = vadd.f32 %v2256_v14, %v2144_v10 }
 0x1e6   : > { %v1432_v17 = vadd.f32 %v2937_v41, %v1292_v16  ;;  %v1463_v18 = vmax.f32 %v1431_v15, 0.0 }
 0x1e8   : > { %v1464_v19 = vmax.f32 %v1432_v17, 0.0 }
 0x1ea   : > { %v2016_v20 = vpack.c.bf16 %v1464_v19, %v1463_v18 }
 0x1ec   : > { %2032 = vst [vmem:[%s2942_s22 + $0x78] sm:$0xff] %v2016_v20  }
 0x1ed   : > { %2573 = shalt.err (!%p2570_p5)
}
 0x1ee   : > { %s2574_s10 = scalar_lea.hbm %s2994_s9, 2048  ;;  %s2578_s29 = scalar_lea.hbm %s3048_s3, 16384 }
 0x1ef   : > { %p2575_p9 = scmp.ne.s32.totalorder %s2994_s9, %s2574_s10  ;;  %p2579_p3 = scmp.lt.u32.totalorder %s2994_s9, %s3048_s3 }
 0x1f0   : > { %p2580_p7 = scmp.lt.u32.totalorder %s2578_s29, %s2574_s10  ;;  %p2582_p1 = scmp.lt.u32.totalorder %s2574_s10, %s2994_s9 }
 0x1f1   : > { %p2576_p12 = pnand %p2575_p9, %p2804_p8 }
 0x1f2   : > { %p2581_p10 = por %p2580_p7, %p2579_p3 }
 0x1f3   : > { %p2577_p11 = pneg %p2576_p12 }
 0x1f4   : > { %p2583_p2 = por %p2582_p1, %p2581_p10 }
 0x1f6   : > { %p2584_p4 = pnand %p2583_p2, %p2577_p11 }
 0x1f8   : > { %2587 = shalt.err (!%p2584_p4)
}
 0x1f9   : > { %s2656_s22 = smov 64   ;;  %s2657_s24 = smov 4  }
 0x1fa   : > { %2267 = dma.vmem_to_hbm [thread:$0]  (%p2804_p8), %s2996_s7, 2048, %s2994_s9, %s1626_s28, %s2656_s22, %s2656_s22, %s2657_s24  }
 0x1fb PF: > { %p2289_p6 = scmp.ge.s32.totalorder %s2646_s17, 2  ;;  %s1655_s8 = sand.u32 1, %s2626_s12  }
 0x1fc   : > { %p3065_p13 = scmp.ne.s32.totalorder %s3056_s23, 0  ;;  %s1656_s26 = scalar_lea.sflag [#allocation5], %s1655_s8 }
 0x1fe   : > { %p2281_p0 = pnand %p2289_p6, %p3065_p13 }
 0x200   : > { %2621 = dma.done.wait (!%p2281_p0), %s1656_s26, 2048  }
 0x201   : > { %2623 = vsyncadd (!%p2281_p0), %s1656_s26, 4294965248  ;;  %s20_s17 = sadd.s32 1, %s2646_s17   ;;  %s3066_s12 = smov %s2630_s13 }
 0x202   : > { %p17_p5 = scmp.ge.s32.totalorder %s20_s17, 10   ;;  %s3067_s13 = smov %s2634_s14 }
 0x203   : > { %s3068_s14 = smov %s2813_s4  ;;  %s3069_s15 = smov %s2642_s16 }
 0x204   : > { %s3070_s16 = smov %s3072_s18  ;;  %19 = sbr.rel (!%p17_p5) target bundleno = 7 (0x7), region = 95 }
 0x20b   :  { %1661 = vsyncpa [#allocation4], 1 }
 0x20c   :  { %1663 = vsyncpa [#allocation4 + $0x1], 1 }
 0x20d   :  { %1664 = vsyncpa [#allocation7], 1 }
 0x20e   :  { %1665 = vsyncpa [#allocation5], 1 }
 0x20f   :  { %1667 = vsyncpa [#allocation5 + $0x1], 1 }

</bundles_post_ra>
